<compile_context>
chip_gen: v6e
topology: v6e:2x2x1
jax: 0.10.0
libtpu: 0.0.40
codegen_flags: <defaults>
</compile_context>

<pallas_src>
from functools import partial

import jax
import jax.numpy as jnp
from jax import lax
from jax.experimental import pallas as pl
from jax.experimental.pallas import tpu as pltpu


# ---------------------------------------------------------------------------
# Kernel: one grid step = `group` whole mask-units (windows) of one batch elem.
#   x_ref    : (group*spw, dim)      windows contiguous, tokens contiguous
#   wq/wk/wv : (dim, dim_out)        attention scale pre-folded into wq / bq
#   bq/bk/bv : (1, dim_out)          float32
#   wp_ref   : (dim_out, dim_out)    bp_ref : (1, dim_out)
#   o_ref    : (group*sq, dim_out)   sq = spw // q_stride
#   attn_ref : (group*sq, dim_out)   f32 VMEM scratch (pre-projection attn out)
# ---------------------------------------------------------------------------
def _mua_kernel(x_ref, wq_ref, wk_ref, wv_ref, bq_ref, bk_ref, bv_ref,
                wp_ref, bp_ref, o_ref, attn_ref,
                *, heads, head_dim, group, spw, q_stride, compute_dtype):
    H, D, g = heads, head_dim, group
    HD = H * D
    sq = spw // q_stride

    x = x_ref[...]                                          # (g*spw, dim)

    # --- QKV projection: three MXU dots, no qkv scratch round trip ----------
    q = jnp.dot(x, wq_ref[...], preferred_element_type=jnp.float32) + bq_ref[...]
    k = jnp.dot(x, wk_ref[...], preferred_element_type=jnp.float32) + bk_ref[...]
    v = jnp.dot(x, wv_ref[...], preferred_element_type=jnp.float32) + bv_ref[...]

    # --- q max-pool (within a window, row i = s*sq + j pools over s) --------
    if q_stride > 1:
        q = jnp.max(q.reshape(g, q_stride, sq, HD), axis=1)  # (g, sq, HD)
    else:
        q = q.reshape(g, sq, HD)
    q = q.astype(compute_dtype)
    k = k.astype(compute_dtype)
    v = v.astype(compute_dtype)

    # --- per-(window, head) attention; results written straight into scratch
    for w in range(g):
        q_w = q[w]                                          # (sq,  HD)
        k_w = k[w * spw:(w + 1) * spw, :]                   # (spw, HD)
        v_w = v[w * spw:(w + 1) * spw, :]                   # (spw, HD)
        for h in range(H):
            c0, c1 = h * D, (h + 1) * D
            s = lax.dot_general(                            # q @ k^T, no transpose
                q_w[:, c0:c1], k_w[:, c0:c1],
                dimension_numbers=(((1,), (1,)), ((), ())),
                preferred_element_type=jnp.float32)         # (sq, spw) f32
            s = s - jnp.max(s, axis=-1, keepdims=True)
            p = jnp.exp(s)
            p = p * pl.reciprocal(jnp.sum(p, axis=-1, keepdims=True), approx=False)
            o_h = jnp.dot(p.astype(compute_dtype), v_w[:, c0:c1],
                          preferred_element_type=jnp.float32)  # (sq, D) f32
            attn_ref[w * sq:(w + 1) * sq, c0:c1] = o_h

    # --- fused output projection; single contiguous store -------------------
    out = (jnp.dot(attn_ref[...].astype(compute_dtype), wp_ref[...],
                   preferred_element_type=jnp.float32) + bp_ref[...])
    o_ref[...] = out.astype(o_ref.dtype)


def _windows_per_step(num_windows, spw, target_rows=128):
    """Smallest divisor g of num_windows with g*spw >= target_rows (else all)."""
    for g in range(1, num_windows + 1):
        if num_windows % g == 0 and g * spw >= target_rows:
            return g
    return num_windows


# ---------------------------------------------------------------------------
# Wrapper
# ---------------------------------------------------------------------------
@partial(jax.jit, static_argnames=("dim_out", "heads", "q_stride", "window_size",
                                   "use_mask_unit_attn", "compute_dtype"))
def mask_unit_attention(x, params, *, dim_out, heads, q_stride, window_size,
                        use_mask_unit_attn, compute_dtype=jnp.bfloat16):
    B, N, dim = x.shape
    assert dim_out % heads == 0
    head_dim = dim_out // heads
    scale = head_dim ** (-0.5)
    W = N // (q_stride * window_size) if use_mask_unit_attn else 1
    assert N % W == 0
    spw = N // W                       # tokens (keys) per window
    assert spw % q_stride == 0
    sq = spw // q_stride               # queries per window after pooling
    g = _windows_per_step(W, spw)      # windows per grid step

    f32 = jnp.float32
    qkv_w, qkv_b = params["qkv_w"], params["qkv_b"]
    # Pre-split qkv columns; fold the attention scale into Wq / bq
    # (max-pooling commutes with a positive scale).
    wq = (qkv_w[:, :dim_out] * scale).astype(compute_dtype)
    wk = qkv_w[:, dim_out:2 * dim_out].astype(compute_dtype)
    wv = qkv_w[:, 2 * dim_out:].astype(compute_dtype)
    bq = (qkv_b[:, :dim_out] * scale).astype(f32)
    bk = qkv_b[:, dim_out:2 * dim_out].astype(f32)
    bv = qkv_b[:, 2 * dim_out:].astype(f32)
    wp = params["proj_w"].astype(compute_dtype)
    bp = params["proj_b"].astype(f32)

    # One-time window de-interleave in XLA (token n = i*W + w):
    #   x_t[b, w*spw + i, :] = x[b, i*W + w, :]
    x_t = (x.reshape(B, spw, W, dim).transpose(0, 2, 1, 3)
            .reshape(B, W * spw, dim).astype(compute_dtype))

    kernel = partial(_mua_kernel, heads=heads, head_dim=head_dim, group=g,
                     spw=spw, q_stride=q_stride, compute_dtype=compute_dtype)
    wspec = lambda b, wg: (0, 0)       # resident weights / biases

    out_w = pl.pallas_call(
        kernel,
        out_shape=jax.ShapeDtypeStruct((B, W * sq, dim_out), x.dtype),
        grid=(B, W // g),
        in_specs=[
            pl.BlockSpec((None, g * spw, dim), lambda b, wg: (b, wg, 0)),
            pl.BlockSpec((dim, dim_out), wspec),
            pl.BlockSpec((dim, dim_out), wspec),
            pl.BlockSpec((dim, dim_out), wspec),
            pl.BlockSpec((1, dim_out), wspec),
            pl.BlockSpec((1, dim_out), wspec),
            pl.BlockSpec((1, dim_out), wspec),
            pl.BlockSpec((dim_out, dim_out), wspec),
            pl.BlockSpec((1, dim_out), wspec),
        ],
        out_specs=pl.BlockSpec((None, g * sq, dim_out), lambda b, wg: (b, wg, 0)),
        scratch_shapes=[pltpu.VMEM((g * sq, dim_out), jnp.float32)],
        compiler_params=pltpu.CompilerParams(
            dimension_semantics=("parallel", "parallel"),
            vmem_limit_bytes=32 * 1024 * 1024),
    )(x_t, wq, wk, wv, bq, bk, bv, wp, bp)

    # Re-interleave windows back to the module's token order (token m = j*W + w).
    return (out_w.reshape(B, W, sq, dim_out).transpose(0, 2, 1, 3)
                 .reshape(B, W * sq, dim_out))


# ---------------------------------------------------------------------------
# Pure-JAX reference (mirrors the PyTorch forward exactly, f32)
# ---------------------------------------------------------------------------
def mask_unit_attention_ref(x, params, *, dim_out, heads, q_stride, window_size,
                            use_mask_unit_attn):
    B, N, _ = x.shape
    head_dim = dim_out // heads
    scale = head_dim ** (-0.5)
    num_windows = N // (q_stride * window_size) if use_mask_unit_attn else 1
    qkv = x @ params["qkv_w"] + params["qkv_b"]
    qkv = qkv.reshape(B, -1, num_windows, 3, heads, head_dim)
    qkv = jnp.transpose(qkv, (3, 0, 4, 2, 1, 5))
    q, k, v = qkv[0], qkv[1], qkv[2]
    if q_stride > 1:
        q = q.reshape(B, heads, num_windows, q_stride, -1, head_dim).max(axis=3)
    attn = jax.nn.softmax((q * scale) @ jnp.swapaxes(k, -1, -2), axis=-1)
    o = attn @ v
    o = jnp.swapaxes(o, 1, 3).reshape(B, -1, dim_out)
    return o @ params["proj_w"] + params["proj_b"]


if __name__ == "__main__":
    # Small but representative: windows + q pooling + multi-head.
    dim, dim_out, heads = 32, 32, 2
    q_stride, window_size = 4, 16          # flattened 2x2 pooling, 16 tokens post-pool
    use_mask_unit_attn = True
    B, N = 2, 256                          # num_windows = 256 / (4*16) = 4

    key = jax.random.PRNGKey(0)
    k1, k2, k3, k4, kx = jax.random.split(key, 5)
    params = {
        "qkv_w": 0.05 * jax.random.normal(k1, (dim, 3 * dim_out), jnp.float32),
        "qkv_b": 0.01 * jax.random.normal(k2, (1, 3 * dim_out), jnp.float32),
        "proj_w": 0.05 * jax.random.normal(k3, (dim_out, dim_out), jnp.float32),
        "proj_b": 0.01 * jax.random.normal(k4, (1, dim_out), jnp.float32),
    }
    x = jax.random.normal(kx, (B, N, dim), jnp.float32)

    kwargs = dict(dim_out=dim_out, heads=heads, q_stride=q_stride,
                  window_size=window_size, use_mask_unit_attn=use_mask_unit_attn)

    out = jax.block_until_ready(mask_unit_attention(x, params, **kwargs))
    ref = mask_unit_attention_ref(x, params, **kwargs)

    assert out.shape == ref.shape == (B, N // q_stride, dim_out)
    max_err = float(jnp.max(jnp.abs(out - ref)))
    # bf16 MXU operands (f32 accumulation / f32 softmax) vs. f32 reference.
    assert jnp.allclose(out, ref, rtol=5e-2, atol=5e-3), max_err
    print("KERNEL_OK")
</pallas_src>

<mosaic_0001>
module attributes {stable_mosaic.version = 11 : i64} {
  func.func @_mua_kernel(%arg0: i32, %arg1: i32, %arg2: memref<1x128x32xbf16, #tpu.memory_space<vmem>>, %arg3: memref<32x32xbf16, #tpu.memory_space<vmem>>, %arg4: memref<32x32xbf16, #tpu.memory_space<vmem>>, %arg5: memref<32x32xbf16, #tpu.memory_space<vmem>>, %arg6: memref<1x32xf32, #tpu.memory_space<vmem>>, %arg7: memref<1x32xf32, #tpu.memory_space<vmem>>, %arg8: memref<1x32xf32, #tpu.memory_space<vmem>>, %arg9: memref<32x32xbf16, #tpu.memory_space<vmem>>, %arg10: memref<1x32xf32, #tpu.memory_space<vmem>>, %arg11: memref<1x32x32xf32, #tpu.memory_space<vmem>>, %arg12: memref<32x32xf32, #tpu.memory_space<vmem>>) attributes {dimension_semantics = [#tpu.dimension_semantics<parallel>, #tpu.dimension_semantics<parallel>], iteration_bounds = array<i64: 2, 2>, scalar_prefetch = 0 : i64, scratch_operands = 1 : i64, tpu.core_type = #tpu.core_type<tc>, window_params = [{transform_indices = @transform_0, window_bounds = array<i64: 1, 128, 32>}, {pipeline_mode = #tpu.pipeline_mode<synchronous>, transform_indices = @transform_1, window_bounds = array<i64: 32, 32>}, {pipeline_mode = #tpu.pipeline_mode<synchronous>, transform_indices = @transform_2, window_bounds = array<i64: 32, 32>}, {pipeline_mode = #tpu.pipeline_mode<synchronous>, transform_indices = @transform_3, window_bounds = array<i64: 32, 32>}, {pipeline_mode = #tpu.pipeline_mode<synchronous>, transform_indices = @transform_4, window_bounds = array<i64: 1, 32>}, {pipeline_mode = #tpu.pipeline_mode<synchronous>, transform_indices = @transform_5, window_bounds = array<i64: 1, 32>}, {pipeline_mode = #tpu.pipeline_mode<synchronous>, transform_indices = @transform_6, window_bounds = array<i64: 1, 32>}, {pipeline_mode = #tpu.pipeline_mode<synchronous>, transform_indices = @transform_7, window_bounds = array<i64: 32, 32>}, {pipeline_mode = #tpu.pipeline_mode<synchronous>, transform_indices = @transform_8, window_bounds = array<i64: 1, 32>}, {transform_indices = @transform_9, window_bounds = array<i64: 1, 32, 32>}]} {
    %c0 = arith.constant 0 : index
    %c0_0 = arith.constant 0 : index
    %c0_1 = arith.constant 0 : index
    %0 = vector.load %arg2[%c0, %c0_0, %c0_1] : memref<1x128x32xbf16, #tpu.memory_space<vmem>>, vector<1x128x32xbf16>
    %1 = vector.shape_cast %0 : vector<1x128x32xbf16> to vector<128x32xbf16>
    %c0_2 = arith.constant 0 : index
    %c0_3 = arith.constant 0 : index
    %2 = vector.load %arg3[%c0_2, %c0_3] : memref<32x32xbf16, #tpu.memory_space<vmem>>, vector<32x32xbf16>
    %cst = arith.constant dense<0.000000e+00> : vector<128x32xf32>
    %3 = tpu.matmul %1, %2, %cst {dimension_numbers = #tpu.dot_dimension_numbers<[1], [0], [0], [1], [0, 0, 1, 1], [], []>} : vector<128x32xbf16>, vector<32x32xbf16>, vector<128x32xf32> -> vector<128x32xf32>
    %c0_4 = arith.constant 0 : index
    %c0_5 = arith.constant 0 : index
    %4 = vector.load %arg6[%c0_4, %c0_5] : memref<1x32xf32, #tpu.memory_space<vmem>>, vector<1x32xf32>
    %5 = vector.broadcast %4 : vector<1x32xf32> to vector<128x32xf32>
    %6 = arith.addf %3, %5 : vector<128x32xf32>
    %c0_6 = arith.constant 0 : index
    %c0_7 = arith.constant 0 : index
    %7 = vector.load %arg4[%c0_6, %c0_7] : memref<32x32xbf16, #tpu.memory_space<vmem>>, vector<32x32xbf16>
    %cst_8 = arith.constant dense<0.000000e+00> : vector<128x32xf32>
    %8 = tpu.matmul %1, %7, %cst_8 {dimension_numbers = #tpu.dot_dimension_numbers<[1], [0], [0], [1], [0, 0, 1, 1], [], []>} : vector<128x32xbf16>, vector<32x32xbf16>, vector<128x32xf32> -> vector<128x32xf32>
    %c0_9 = arith.constant 0 : index
    %c0_10 = arith.constant 0 : index
    %9 = vector.load %arg7[%c0_9, %c0_10] : memref<1x32xf32, #tpu.memory_space<vmem>>, vector<1x32xf32>
    %10 = vector.broadcast %9 : vector<1x32xf32> to vector<128x32xf32>
    %11 = arith.addf %8, %10 : vector<128x32xf32>
    %c0_11 = arith.constant 0 : index
    %c0_12 = arith.constant 0 : index
    %12 = vector.load %arg5[%c0_11, %c0_12] : memref<32x32xbf16, #tpu.memory_space<vmem>>, vector<32x32xbf16>
    %cst_13 = arith.constant dense<0.000000e+00> : vector<128x32xf32>
    %13 = tpu.matmul %1, %12, %cst_13 {dimension_numbers = #tpu.dot_dimension_numbers<[1], [0], [0], [1], [0, 0, 1, 1], [], []>} : vector<128x32xbf16>, vector<32x32xbf16>, vector<128x32xf32> -> vector<128x32xf32>
    %c0_14 = arith.constant 0 : index
    %c0_15 = arith.constant 0 : index
    %14 = vector.load %arg8[%c0_14, %c0_15] : memref<1x32xf32, #tpu.memory_space<vmem>>, vector<1x32xf32>
    %15 = vector.broadcast %14 : vector<1x32xf32> to vector<128x32xf32>
    %16 = arith.addf %13, %15 : vector<128x32xf32>
    %17 = vector.shape_cast %6 : vector<128x32xf32> to vector<2x4x16x32xf32>
    %cst_16 = arith.constant dense<0xFF800000> : vector<2x16x32xf32>
    %18 = vector.multi_reduction <maximumf>, %17, %cst_16 [1] : vector<2x4x16x32xf32> to vector<2x16x32xf32>
    %19 = arith.truncf %18 : vector<2x16x32xf32> to vector<2x16x32xbf16>
    %20 = arith.truncf %11 : vector<128x32xf32> to vector<128x32xbf16>
    %21 = arith.truncf %16 : vector<128x32xf32> to vector<128x32xbf16>
    %22 = vector.extract_strided_slice %19 {offsets = [0, 0, 0], sizes = [1, 16, 32], strides = [1, 1, 1]} : vector<2x16x32xbf16> to vector<1x16x32xbf16>
    %23 = vector.shape_cast %22 : vector<1x16x32xbf16> to vector<16x32xbf16>
    %24 = vector.extract_strided_slice %20 {offsets = [0, 0], sizes = [64, 32], strides = [1, 1]} : vector<128x32xbf16> to vector<64x32xbf16>
    %25 = vector.extract_strided_slice %21 {offsets = [0, 0], sizes = [64, 32], strides = [1, 1]} : vector<128x32xbf16> to vector<64x32xbf16>
    %26 = vector.extract_strided_slice %23 {offsets = [0, 0], sizes = [16, 16], strides = [1, 1]} : vector<16x32xbf16> to vector<16x16xbf16>
    %27 = vector.extract_strided_slice %24 {offsets = [0, 0], sizes = [64, 16], strides = [1, 1]} : vector<64x32xbf16> to vector<64x16xbf16>
    %cst_17 = arith.constant dense<0.000000e+00> : vector<16x64xf32>
    %28 = tpu.matmul %26, %27, %cst_17 {dimension_numbers = #tpu.dot_dimension_numbers<[1], [1], [0], [0], [0, 0, 1, 0], [], []>} : vector<16x16xbf16>, vector<64x16xbf16>, vector<16x64xf32> -> vector<16x64xf32>
    %cst_18 = arith.constant dense<0xFF800000> : vector<16xf32>
    %29 = vector.multi_reduction <maximumf>, %28, %cst_18 [1] : vector<16x64xf32> to vector<16xf32>
    %30 = vector.shape_cast %29 : vector<16xf32> to vector<16x1xf32>
    %31 = vector.broadcast %30 : vector<16x1xf32> to vector<16x64xf32>
    %32 = arith.subf %28, %31 : vector<16x64xf32>
    %33 = math.exp %32 : vector<16x64xf32>
    %cst_19 = arith.constant dense<0.000000e+00> : vector<16xf32>
    %34 = vector.multi_reduction <add>, %33, %cst_19 [1] : vector<16x64xf32> to vector<16xf32>
    %35 = vector.shape_cast %34 : vector<16xf32> to vector<16x1xf32>
    %36 = tpu.reciprocal %35 : vector<16x1xf32> -> vector<16x1xf32>
    %37 = vector.broadcast %36 : vector<16x1xf32> to vector<16x64xf32>
    %38 = arith.mulf %33, %37 : vector<16x64xf32>
    %39 = arith.truncf %38 : vector<16x64xf32> to vector<16x64xbf16>
    %40 = vector.extract_strided_slice %25 {offsets = [0, 0], sizes = [64, 16], strides = [1, 1]} : vector<64x32xbf16> to vector<64x16xbf16>
    %cst_20 = arith.constant dense<0.000000e+00> : vector<16x16xf32>
    %41 = tpu.matmul %39, %40, %cst_20 {dimension_numbers = #tpu.dot_dimension_numbers<[1], [0], [0], [1], [0, 0, 1, 1], [], []>} : vector<16x64xbf16>, vector<64x16xbf16>, vector<16x16xf32> -> vector<16x16xf32>
    %c0_21 = arith.constant 0 : index
    %c0_22 = arith.constant 0 : index
    %42 = vector.load %arg12[%c0_21, %c0_22] : memref<32x32xf32, #tpu.memory_space<vmem>>, vector<16x16xf32>
    tpu.vector_store %arg12[%c0_21, %c0_22], %41 {strides = array<i32>} : memref<32x32xf32, #tpu.memory_space<vmem>>, vector<16x16xf32>,
    %43 = vector.extract_strided_slice %23 {offsets = [0, 16], sizes = [16, 16], strides = [1, 1]} : vector<16x32xbf16> to vector<16x16xbf16>
    %44 = vector.extract_strided_slice %24 {offsets = [0, 16], sizes = [64, 16], strides = [1, 1]} : vector<64x32xbf16> to vector<64x16xbf16>
    %cst_23 = arith.constant dense<0.000000e+00> : vector<16x64xf32>
    %45 = tpu.matmul %43, %44, %cst_23 {dimension_numbers = #tpu.dot_dimension_numbers<[1], [1], [0], [0], [0, 0, 1, 0], [], []>} : vector<16x16xbf16>, vector<64x16xbf16>, vector<16x64xf32> -> vector<16x64xf32>
    %cst_24 = arith.constant dense<0xFF800000> : vector<16xf32>
    %46 = vector.multi_reduction <maximumf>, %45, %cst_24 [1] : vector<16x64xf32> to vector<16xf32>
    %47 = vector.shape_cast %46 : vector<16xf32> to vector<16x1xf32>
    %48 = vector.broadcast %47 : vector<16x1xf32> to vector<16x64xf32>
    %49 = arith.subf %45, %48 : vector<16x64xf32>
    %50 = math.exp %49 : vector<16x64xf32>
    %cst_25 = arith.constant dense<0.000000e+00> : vector<16xf32>
    %51 = vector.multi_reduction <add>, %50, %cst_25 [1] : vector<16x64xf32> to vector<16xf32>
    %52 = vector.shape_cast %51 : vector<16xf32> to vector<16x1xf32>
    %53 = tpu.reciprocal %52 : vector<16x1xf32> -> vector<16x1xf32>
    %54 = vector.broadcast %53 : vector<16x1xf32> to vector<16x64xf32>
    %55 = arith.mulf %50, %54 : vector<16x64xf32>
    %56 = arith.truncf %55 : vector<16x64xf32> to vector<16x64xbf16>
    %57 = vector.extract_strided_slice %25 {offsets = [0, 16], sizes = [64, 16], strides = [1, 1]} : vector<64x32xbf16> to vector<64x16xbf16>
    %cst_26 = arith.constant dense<0.000000e+00> : vector<16x16xf32>
    %58 = tpu.matmul %56, %57, %cst_26 {dimension_numbers = #tpu.dot_dimension_numbers<[1], [0], [0], [1], [0, 0, 1, 1], [], []>} : vector<16x64xbf16>, vector<64x16xbf16>, vector<16x16xf32> -> vector<16x16xf32>
    %c0_27 = arith.constant 0 : index
    %c16 = arith.constant 16 : index
    %59 = vector.load %arg12[%c0_27, %c16] : memref<32x32xf32, #tpu.memory_space<vmem>>, vector<16x16xf32>
    tpu.vector_store %arg12[%c0_27, %c16], %58 {strides = array<i32>} : memref<32x32xf32, #tpu.memory_space<vmem>>, vector<16x16xf32>,
    %60 = vector.extract_strided_slice %19 {offsets = [1, 0, 0], sizes = [1, 16, 32], strides = [1, 1, 1]} : vector<2x16x32xbf16> to vector<1x16x32xbf16>
    %61 = vector.shape_cast %60 : vector<1x16x32xbf16> to vector<16x32xbf16>
    %62 = vector.extract_strided_slice %20 {offsets = [64, 0], sizes = [64, 32], strides = [1, 1]} : vector<128x32xbf16> to vector<64x32xbf16>
    %63 = vector.extract_strided_slice %21 {offsets = [64, 0], sizes = [64, 32], strides = [1, 1]} : vector<128x32xbf16> to vector<64x32xbf16>
    %64 = vector.extract_strided_slice %61 {offsets = [0, 0], sizes = [16, 16], strides = [1, 1]} : vector<16x32xbf16> to vector<16x16xbf16>
    %65 = vector.extract_strided_slice %62 {offsets = [0, 0], sizes = [64, 16], strides = [1, 1]} : vector<64x32xbf16> to vector<64x16xbf16>
    %cst_28 = arith.constant dense<0.000000e+00> : vector<16x64xf32>
    %66 = tpu.matmul %64, %65, %cst_28 {dimension_numbers = #tpu.dot_dimension_numbers<[1], [1], [0], [0], [0, 0, 1, 0], [], []>} : vector<16x16xbf16>, vector<64x16xbf16>, vector<16x64xf32> -> vector<16x64xf32>
    %cst_29 = arith.constant dense<0xFF800000> : vector<16xf32>
    %67 = vector.multi_reduction <maximumf>, %66, %cst_29 [1] : vector<16x64xf32> to vector<16xf32>
    %68 = vector.shape_cast %67 : vector<16xf32> to vector<16x1xf32>
    %69 = vector.broadcast %68 : vector<16x1xf32> to vector<16x64xf32>
    %70 = arith.subf %66, %69 : vector<16x64xf32>
    %71 = math.exp %70 : vector<16x64xf32>
    %cst_30 = arith.constant dense<0.000000e+00> : vector<16xf32>
    %72 = vector.multi_reduction <add>, %71, %cst_30 [1] : vector<16x64xf32> to vector<16xf32>
    %73 = vector.shape_cast %72 : vector<16xf32> to vector<16x1xf32>
    %74 = tpu.reciprocal %73 : vector<16x1xf32> -> vector<16x1xf32>
    %75 = vector.broadcast %74 : vector<16x1xf32> to vector<16x64xf32>
    %76 = arith.mulf %71, %75 : vector<16x64xf32>
    %77 = arith.truncf %76 : vector<16x64xf32> to vector<16x64xbf16>
    %78 = vector.extract_strided_slice %63 {offsets = [0, 0], sizes = [64, 16], strides = [1, 1]} : vector<64x32xbf16> to vector<64x16xbf16>
    %cst_31 = arith.constant dense<0.000000e+00> : vector<16x16xf32>
    %79 = tpu.matmul %77, %78, %cst_31 {dimension_numbers = #tpu.dot_dimension_numbers<[1], [0], [0], [1], [0, 0, 1, 1], [], []>} : vector<16x64xbf16>, vector<64x16xbf16>, vector<16x16xf32> -> vector<16x16xf32>
    %c16_32 = arith.constant 16 : index
    %c0_33 = arith.constant 0 : index
    %80 = vector.load %arg12[%c16_32, %c0_33] : memref<32x32xf32, #tpu.memory_space<vmem>>, vector<16x16xf32>
    tpu.vector_store %arg12[%c16_32, %c0_33], %79 {strides = array<i32>} : memref<32x32xf32, #tpu.memory_space<vmem>>, vector<16x16xf32>,
    %81 = vector.extract_strided_slice %61 {offsets = [0, 16], sizes = [16, 16], strides = [1, 1]} : vector<16x32xbf16> to vector<16x16xbf16>
    %82 = vector.extract_strided_slice %62 {offsets = [0, 16], sizes = [64, 16], strides = [1, 1]} : vector<64x32xbf16> to vector<64x16xbf16>
    %cst_34 = arith.constant dense<0.000000e+00> : vector<16x64xf32>
    %83 = tpu.matmul %81, %82, %cst_34 {dimension_numbers = #tpu.dot_dimension_numbers<[1], [1], [0], [0], [0, 0, 1, 0], [], []>} : vector<16x16xbf16>, vector<64x16xbf16>, vector<16x64xf32> -> vector<16x64xf32>
    %cst_35 = arith.constant dense<0xFF800000> : vector<16xf32>
    %84 = vector.multi_reduction <maximumf>, %83, %cst_35 [1] : vector<16x64xf32> to vector<16xf32>
    %85 = vector.shape_cast %84 : vector<16xf32> to vector<16x1xf32>
    %86 = vector.broadcast %85 : vector<16x1xf32> to vector<16x64xf32>
    %87 = arith.subf %83, %86 : vector<16x64xf32>
    %88 = math.exp %87 : vector<16x64xf32>
    %cst_36 = arith.constant dense<0.000000e+00> : vector<16xf32>
    %89 = vector.multi_reduction <add>, %88, %cst_36 [1] : vector<16x64xf32> to vector<16xf32>
    %90 = vector.shape_cast %89 : vector<16xf32> to vector<16x1xf32>
    %91 = tpu.reciprocal %90 : vector<16x1xf32> -> vector<16x1xf32>
    %92 = vector.broadcast %91 : vector<16x1xf32> to vector<16x64xf32>
    %93 = arith.mulf %88, %92 : vector<16x64xf32>
    %94 = arith.truncf %93 : vector<16x64xf32> to vector<16x64xbf16>
    %95 = vector.extract_strided_slice %63 {offsets = [0, 16], sizes = [64, 16], strides = [1, 1]} : vector<64x32xbf16> to vector<64x16xbf16>
    %cst_37 = arith.constant dense<0.000000e+00> : vector<16x16xf32>
    %96 = tpu.matmul %94, %95, %cst_37 {dimension_numbers = #tpu.dot_dimension_numbers<[1], [0], [0], [1], [0, 0, 1, 1], [], []>} : vector<16x64xbf16>, vector<64x16xbf16>, vector<16x16xf32> -> vector<16x16xf32>
    %c16_38 = arith.constant 16 : index
    %c16_39 = arith.constant 16 : index
    %97 = vector.load %arg12[%c16_38, %c16_39] : memref<32x32xf32, #tpu.memory_space<vmem>>, vector<16x16xf32>
    tpu.vector_store %arg12[%c16_38, %c16_39], %96 {strides = array<i32>} : memref<32x32xf32, #tpu.memory_space<vmem>>, vector<16x16xf32>,
    %c0_40 = arith.constant 0 : index
    %c0_41 = arith.constant 0 : index
    %98 = vector.load %arg12[%c0_40, %c0_41] : memref<32x32xf32, #tpu.memory_space<vmem>>, vector<32x32xf32>
    %99 = arith.truncf %98 : vector<32x32xf32> to vector<32x32xbf16>
    %c0_42 = arith.constant 0 : index
    %c0_43 = arith.constant 0 : index
    %100 = vector.load %arg9[%c0_42, %c0_43] : memref<32x32xbf16, #tpu.memory_space<vmem>>, vector<32x32xbf16>
    %cst_44 = arith.constant dense<0.000000e+00> : vector<32x32xf32>
    %101 = tpu.matmul %99, %100, %cst_44 {dimension_numbers = #tpu.dot_dimension_numbers<[1], [0], [0], [1], [0, 0, 1, 1], [], []>} : vector<32x32xbf16>, vector<32x32xbf16>, vector<32x32xf32> -> vector<32x32xf32>
    %c0_45 = arith.constant 0 : index
    %c0_46 = arith.constant 0 : index
    %102 = vector.load %arg10[%c0_45, %c0_46] : memref<1x32xf32, #tpu.memory_space<vmem>>, vector<1x32xf32>
    %103 = vector.broadcast %102 : vector<1x32xf32> to vector<32x32xf32>
    %104 = arith.addf %101, %103 : vector<32x32xf32>
    %c0_47 = arith.constant 0 : index
    %c0_48 = arith.constant 0 : index
    %c0_49 = arith.constant 0 : index
    %105 = vector.load %arg11[%c0_47, %c0_48, %c0_49] : memref<1x32x32xf32, #tpu.memory_space<vmem>>, vector<1x32x32xf32>
    %106 = vector.shape_cast %105 : vector<1x32x32xf32> to vector<32x32xf32>
    %107 = vector.shape_cast %104 : vector<32x32xf32> to vector<1x32x32xf32>
    tpu.vector_store %arg11[%c0_47, %c0_48, %c0_49], %107 {strides = array<i32>} : memref<1x32x32xf32, #tpu.memory_space<vmem>>, vector<1x32x32xf32>,
    return
  }
  func.func @transform_0(%arg0: i32, %arg1: i32) -> (i32, i32, i32) {
    %c0_i32 = arith.constant 0 : i32
    %c0_i32_0 = arith.constant 0 : i32
    return %arg0, %arg1, %c0_i32 : i32, i32, i32
  }
  func.func @transform_1(%arg0: i32, %arg1: i32) -> (i32, i32) {
    %c0_i32 = arith.constant 0 : i32
    %c0_i32_0 = arith.constant 0 : i32
    %c0_i32_1 = arith.constant 0 : i32
    return %c0_i32, %c0_i32_0 : i32, i32
  }
  func.func @transform_2(%arg0: i32, %arg1: i32) -> (i32, i32) {
    %c0_i32 = arith.constant 0 : i32
    %c0_i32_0 = arith.constant 0 : i32
    %c0_i32_1 = arith.constant 0 : i32
    return %c0_i32, %c0_i32_0 : i32, i32
  }
  func.func @transform_3(%arg0: i32, %arg1: i32) -> (i32, i32) {
    %c0_i32 = arith.constant 0 : i32
    %c0_i32_0 = arith.constant 0 : i32
    %c0_i32_1 = arith.constant 0 : i32
    return %c0_i32, %c0_i32_0 : i32, i32
  }
  func.func @transform_4(%arg0: i32, %arg1: i32) -> (i32, i32) {
    %c0_i32 = arith.constant 0 : i32
    %c0_i32_0 = arith.constant 0 : i32
    %c0_i32_1 = arith.constant 0 : i32
    return %c0_i32, %c0_i32_0 : i32, i32
  }
  func.func @transform_5(%arg0: i32, %arg1: i32) -> (i32, i32) {
    %c0_i32 = arith.constant 0 : i32
    %c0_i32_0 = arith.constant 0 : i32
    %c0_i32_1 = arith.constant 0 : i32
    return %c0_i32, %c0_i32_0 : i32, i32
  }
  func.func @transform_6(%arg0: i32, %arg1: i32) -> (i32, i32) {
    %c0_i32 = arith.constant 0 : i32
    %c0_i32_0 = arith.constant 0 : i32
    %c0_i32_1 = arith.constant 0 : i32
    return %c0_i32, %c0_i32_0 : i32, i32
  }
  func.func @transform_7(%arg0: i32, %arg1: i32) -> (i32, i32) {
    %c0_i32 = arith.constant 0 : i32
    %c0_i32_0 = arith.constant 0 : i32
    %c0_i32_1 = arith.constant 0 : i32
    return %c0_i32, %c0_i32_0 : i32, i32
  }
  func.func @transform_8(%arg0: i32, %arg1: i32) -> (i32, i32) {
    %c0_i32 = arith.constant 0 : i32
    %c0_i32_0 = arith.constant 0 : i32
    %c0_i32_1 = arith.constant 0 : i32
    return %c0_i32, %c0_i32_0 : i32, i32
  }
  func.func @transform_9(%arg0: i32, %arg1: i32) -> (i32, i32, i32) {
    %c0_i32 = arith.constant 0 : i32
    %c0_i32_0 = arith.constant 0 : i32
    return %arg0, %arg1, %c0_i32 : i32, i32, i32
  }
}

</mosaic_0001>

<bundles_post_ra>
// kernel: mask_unit_attention.1
= control target key start
LH: loop header
LB: loop body
LE: loop exit
PB: predicated region body
PF: predicated region fallthrough
CT: control target
= control target key end

     0   :  { %s2110_s30 = smov 0   ;;  %s2112_s10 = smov 0   ;;  %s2469_s0 = inlined_call_operand.vmem [shape: bf16[2,256,32], index: 0, kind: input, shape index: {}]   ;;  %s2470_s1 = inlined_call_operand.vmem [shape: bf16[32,32], index: 1, kind: input, shape index: {}]   ;;  %s2471_s2 = inlined_call_operand.vmem [shape: bf16[32,32], index: 2, kind: input, shape index: {}]   ;;  %s2472_s3 = inlined_call_operand.vmem [shape: bf16[32,32], index: 3, kind: input, shape index: {}]   ;;  %s2473_s4 = inlined_call_operand.vmem [shape: f32[1,32], index: 4, kind: input, shape index: {}]   ;;  %s2474_s5 = inlined_call_operand.vmem [shape: f32[1,32], index: 5, kind: input, shape index: {}]   ;;  %s2475_s6 = inlined_call_operand.vmem [shape: f32[1,32], index: 6, kind: input, shape index: {}]   ;;  %s2476_s7 = inlined_call_operand.vmem [shape: bf16[32,32], index: 7, kind: input, shape index: {}]   ;;  %s2477_s8 = inlined_call_operand.vmem [shape: f32[1,32], index: 8, kind: input, shape index: {}]   ;;  %s2478_s9 = inlined_call_operand.vmem [shape: f32[2,64,32], index: 9, kind: output, shape index: {}]  }
   0x1   :  { %s2114_s11 = smov 0   ;;  %s2116_s12 = smov 0  }
   0x2   :  { %s2118_s13 = smov 0  }
   0x3 LB: > { %s28_s14 = sadd.s32 1, %s2046_s11  ;;  %s31_s15 = sadd.s32 1, %s2050_s12  ;;  %s2054_s13 = sphi %s2118_s13, %s19_s13   ;;  %s2050_s12 = sphi %s2116_s12, %s2482_s12   ;;  %s2046_s11 = sphi %s2114_s11, %s2481_s11   ;;  %s2042_s10 = sphi %s2112_s10, %s2480_s10   ;;  %s2038_s30 = sphi %s2110_s30, %s2479_s30  }
   0x4   : > { %p29_p0 = scmp.ge.s32.totalorder %s28_s14, 2  ;;  %p1623_p1 = scmp.ge.s32.totalorder %s2054_s13, 1 }
   0x5   : > { %p308_p2 = scmp.lt.s32.totalorder %s2054_s13, 5 }
   0x6   : > { %s2484_s14 = smov (%p29_p0, %s28_s14), 0  ;;  %s2486_s15 = smov (!%p29_p0, %s31_s15), %s2050_s12 }
   0x7   : > { %p309_p3 = pnand %p1623_p1, %p308_p2  ;;  %p33_p4 = scmp.ge.s32.totalorder %s2486_s15, 2 }
   0x8   : > { %s1624_s18 = sshll.u32 (!%p309_p3), %s2038_s30, 4  ;;  %p353_p5 = scmp.lt.s32.totalorder (!%p309_p3), %s2042_s10, 1 }
   0x9   : > { %s2488_s15 = smov (%p33_p4, %s2486_s15), 0  ;;  %312 = sbr.rel (%p309_p3) target bundleno = 2014 (0x7de), region = 56 }
   0xa   : > { %p355_p6 = scmp.lt.s32.totalorder (!%p309_p3), %s1624_s18, 31  ;;  %s2059_s28 = smov (!%p309_p3), 16  }
   0xb   : > { %s1627_s19 = sshll.u32 (!%p309_p3), %s2038_s30, 2 }
   0xc   : > { %p365_p7 = scmp.lt.s32.totalorder (!%p309_p3), %s1627_s19, 7 }
   0xe   : > { %v1968_v0 = vld [vmem:[%s2471_s2 + $0x8] sm:$0xff]   ;;  %v1969_v1 = vld [vmem:[%s2471_s2] sm:$0xff]   ;;  %s2490_s10 = smov (!%p353_p5, %s2042_s10), 1  ;;  %s2492_s18 = smov (!%p355_p6, %s1624_s18), 31  ;;  %vm452_vm0 = vcmask 261120   ;;  %v2056_v12 = vmov 0.0  }
   0xf   : > { %1780 = vmatprep.subr.bf16.mxu1 %v1968_v0  ;;  %v1972_v2 = vld [vmem:[%s2470_s1 + $0x8] sm:$0xff]   ;;  %v1975_v3 = vld [vmem:[%s2470_s1] sm:$0xff]   ;;  %s1625_s25 = sshll.u32 %s2490_s10, 5  ;;  %vm2057_vm1 = vmmov 0   ;;  %vm860_vm2 = vcmask 130048   ;;  %vm917_vm3 = vcmask 523264  }
  0x10   : > { %1781 = vmatpush3.bf16.msra.mxu1 %v1968_v0  ;;  %1760 = vmatprep.subr.bf16.mxu0 %v1972_v2  ;;  %s358_s26 = sadd.s32 %s1625_s25, %s2492_s18  ;;  %v1980_v13 = vld [vmem:[%s2472_s3 + $0x8] sm:$0xff]   ;;  %v1981_v14 = vld [vmem:[%s2472_s3] sm:$0xff]   ;;  %s2058_s25 = smov 112   ;;  %vm1149_vm4 = vcmask 261248  }
  0x11   : > { %1782 = vmatprep.subr.bf16.mxu1 %v1969_v1  ;;  %1761 = vmatpush3.bf16.msra.mxu0 %v1972_v2  ;;  %s1626_s27 = sshll.u32 %s358_s26, 2  ;;  %v2200_v17 = vld [vmem:[%s2473_s4] ss:$0 sm:$0xff]  ;;  %s2494_s19 = smov (!%p365_p7, %s1627_s19), 7 }
  0x12   : > { %1762 = vmatprep.subr.bf16.mxu0 %v1975_v3  ;;  %s360_s16 = scalar_lea.vmem %s2469_s0, %s1626_s27  ;;  %v2205_v18 = vld [vmem:[%s2474_s5] ss:$0 sm:$0xff]  ;;  %s1628_s20 = sshll.u32 %s2490_s10, 3 }
  0x13   : > { %v1970_v4 = vld [vmem:[%s360_s16] sm:$0xff]   ;;  %v1971_v5 = vld [vmem:[%s360_s16 + $0x8] sm:$0xff]   ;;  %v1973_v6 = vld [vmem:[%s360_s16 + $0x10] sm:$0xff]   ;;  %s368_s21 = sadd.s32 %s1628_s20, %s2494_s19 }
  0x14   : > { %1783 = vmatpush3.bf16.msra.mxu1 %v1969_v1  ;;  %1784 = vmatprep.mubr.msk.bf16.mxu1 %vm452_vm0, %v1970_v4  ;;  %v1974_v7 = vld [vmem:[%s360_s16 + $0x18] sm:$0xff]   ;;  %v1976_v8 = vld [vmem:[%s360_s16 + $0x20] sm:$0xff]   ;;  %v1977_v9 = vld [vmem:[%s360_s16 + $0x28] sm:$0xff]   ;;  %s1629_s22 = sshll.u32 %s368_s21, 3 }
  0x15   : > { %1763 = vmatpush3.bf16.msra.mxu0 %v1975_v3  ;;  %1764 = vmatprep.mubr.msk.bf16.mxu0 %vm452_vm0, %v1970_v4  ;;  %v1978_v10 = vld [vmem:[%s360_s16 + $0x30] sm:$0xff]   ;;  %v1979_v11 = vld [vmem:[%s360_s16 + $0x38] sm:$0xff]   ;;  %s370_s27 = scalar_lea.vmem %s2478_s9, %s1629_s22 }
  0x16   : > { %1820 = vmatprep.subr.bf16.mxu1 %v2056_v12  ;;  %1800 = vmatprep.subr.bf16.mxu0 %v1980_v13 }
  0x17   : > { %1785 = vmatmul.mubr.msk.bf16.vlgmr.msra.gmra.mxu1 %vm452_vm0, %v1971_v5 }
  0x18   : > { %1788 = vmatprep.mubr.msk.bf16.mxu1 %vm452_vm0, %v1973_v6  ;;  %1765 = vmatmul.mubr.msk.bf16.vlgmr.msra.gmra.mxu0 %vm452_vm0, %v1971_v5 }
  0x19   : > { %1768 = vmatprep.mubr.msk.bf16.mxu0 %vm452_vm0, %v1973_v6  ;;  %1801 = vmatpush3.bf16.msra.mxu0 %v1980_v13 }
  0x1a   : > { %1802 = vmatprep.subr.bf16.mxu0 %v1981_v14 }
  0x1d   : > { %1803 = vmatpush3.bf16.msra.mxu0 %v1981_v14 }
  0x1e   : > { %1844 = vmatprep.subr.bf16.mxu0 %v2056_v12 }
  0x1f   : > { %1789 = vmatmul.mubr.msk.bf16.gmra.mxu1 %vm452_vm0, %v1974_v7 }
  0x20   : > { %1769 = vmatmul.mubr.msk.bf16.gmra.mxu0 %vm452_vm0, %v1974_v7  ;;  %1792 = vmatprep.mubr.msk.bf16.mxu1 %vm452_vm0, %v1976_v8 }
  0x21   : > { %1772 = vmatprep.mubr.msk.bf16.mxu0 %vm452_vm0, %v1976_v8 }
  0x27   : > { %1793 = vmatmul.mubr.msk.bf16.gmra.mxu1 %vm452_vm0, %v1977_v9 }
  0x28   : > { %1796 = vmatprep.mubr.msk.bf16.mxu1 %vm452_vm0, %v1978_v10  ;;  %1773 = vmatmul.mubr.msk.bf16.gmra.mxu0 %vm452_vm0, %v1977_v9 }
  0x29   : > { %1776 = vmatprep.mubr.msk.bf16.mxu0 %vm452_vm0, %v1978_v10 }
  0x2f   : > { %1797 = vmatmul.mubr.msk.bf16.gmra.mxu1 %vm452_vm0, %v1979_v11 }
  0x30   : > { %1777 = vmatmul.mubr.msk.bf16.gmra.mxu0 %vm452_vm0, %v1979_v11  ;;  %1828 = vmatprep.mubr.msk.bf16.mxu1 %vm2057_vm1, %v2056_v12 }
  0x31   : > { %1804 = vmatprep.mubr.msk.bf16.mxu0 %vm452_vm0, %v1970_v4 }
  0x38   : > { %1805 = vmatmul.mubr.msk.bf16.vlgmr.msra.gmra.mxu0 %vm452_vm0, %v1971_v5 }
  0x39   : > { %1808 = vmatprep.mubr.msk.bf16.mxu0 %vm452_vm0, %v1973_v6 }
  0x40   : > { %1809 = vmatmul.mubr.msk.bf16.gmra.mxu0 %vm452_vm0, %v1974_v7 }
  0x41   : > { %1812 = vmatprep.mubr.msk.bf16.mxu0 %vm452_vm0, %v1976_v8 }
  0x48   : > { %1813 = vmatmul.mubr.msk.bf16.gmra.mxu0 %vm452_vm0, %v1977_v9 }
  0x49   : > { %1816 = vmatprep.mubr.msk.bf16.mxu0 %vm452_vm0, %v1978_v10 }
  0x50   : > { %1817 = vmatmul.mubr.msk.bf16.gmra.mxu0 %vm452_vm0, %v1979_v11 }
  0x51   : > { %1852 = vmatprep.mubr.msk.bf16.mxu0 %vm2057_vm1, %v2056_v12 }
  0xd7   : > { %v1786_v15 = vpop.f32.mrf.mxu1 }
  0xd8   : > { %v1766_v16 = vpop.f32.mrf.mxu0  ;;  %v640_v24 = vadd.f32 %v1786_v15, %v2205_v18 }
  0xd9   : > { %v631_v19 = vpop.f32.mrf.mxu1  ;;  %v520_v22 = vadd.f32 %v1766_v16, %v2200_v17 }
  0xda   : > { %v511_v20 = vpop.f32.mrf.mxu0  ;;  %v632_v36 = vadd.f32 %v2205_v18, %v631_v19 }
  0xdb   : > { %v1787_v21 = vpop.f32.mrf.mxu1  ;;  %v512_v23 = vadd.f32 %v2200_v17, %v511_v20  ;;  %v815_v32 = vsel %vm452_vm0, %v520_v22, -inf }
  0xdc   : > { %v643_v25 = vadd.f32 %v1787_v21, %v2205_v18  ;;  %v1767_v26 = vpop.f32.mrf.mxu0 }
  0xdd   : > { %v634_v27 = vpop.f32.mrf.mxu1  ;;  %v814_v33 = vsel %vm452_vm0, %v512_v23, -inf  ;;  %v523_v34 = vadd.f32 %v1767_v26, %v2200_v17 }
  0xde   : > { %v635_v28 = vadd.f32 %v2205_v18, %v634_v27  ;;  %v845_v29 = vpack.c.bf16 %v643_v25, %v640_v24  ;;  %v514_v30 = vpop.f32.mrf.mxu0  ;;  %v816_v40 = vmax.f32 %v814_v33, %v815_v32 }
  0xdf   : > { %v1790_v31 = vpop.f32.mrf.mxu1  ;;  %v515_v35 = vadd.f32 %v2200_v17, %v514_v30  ;;  %v822_v43 = vsel %vm452_vm0, %v523_v34, -inf }
  0xe0   : > { %996 = vrot.lane.b32.xlu1 %v845_v29, %s2058_s25  ;;  %v1770_v37 = vpop.f32.mrf.mxu0  ;;  %v844_v39 = vpack.c.bf16 %v635_v28, %v632_v36  ;;  %v656_v47 = vadd.f32 %v1790_v31, %v2205_v18  ;;  %v868_v6 = vsel %vm860_vm2, %v845_v29, 0 }
  0xe1   : > { %v647_v38 = vpop.f32.mrf.mxu1  ;;  %v821_v44 = vsel %vm452_vm0, %v515_v35, -inf  ;;  %v536_v45 = vadd.f32 %v1770_v37, %v2200_v17 }
  0xe2   : > { %v527_v41 = vpop.f32.mrf.mxu0  ;;  %v823_v55 = vmax.f32 %v821_v44, %v822_v43  ;;  %v648_v60 = vadd.f32 %v2205_v18, %v647_v38  ;;  %v865_v9 = vsel %vm860_vm2, %v844_v39, 0 }
  0xe3   : > { %v1791_v42 = vpop.f32.mrf.mxu1  ;;  %v528_v46 = vadd.f32 %v2200_v17, %v527_v41  ;;  %v819_v58 = vsel %vm452_vm0, %v536_v45, -inf }
  0xe4   : > { %v659_v48 = vadd.f32 %v1791_v42, %v2205_v18  ;;  %994 = vrot.lane.b32.xlu1 %v844_v39, %s2058_s25  ;;  %v1771_v49 = vpop.f32.mrf.mxu0 }
  0xe5   : > { %v650_v50 = vpop.f32.mrf.mxu1  ;;  %v817_v51 = vsel %vm452_vm0, %v528_v46, -inf  ;;  %v539_v52 = vadd.f32 %v1771_v49, %v2200_v17 }
  0xe6   : > { %v651_v53 = vadd.f32 %v2205_v18, %v650_v50  ;;  %v847_v54 = vpack.c.bf16 %v659_v48, %v656_v47  ;;  %v818_v56 = vmax.f32 %v816_v40, %v817_v51  ;;  %v530_v57 = vpop.f32.mrf.mxu0 }
  0xe7   : > { %v531_v59 = vadd.f32 %v2200_v17, %v530_v57  ;;  %v826_v62 = vsel %vm452_vm0, %v539_v52, -inf  ;;  %v2265_v44 = vpop.f32.mrf.mxu1 }
  0xe8   : > { %1000 = vrot.lane.b32.xlu0 %v847_v54, %s2058_s25  ;;  %v874_v61 = vsel %vm860_vm2, %v847_v54, 0  ;;  %v846_v0 = vpack.c.bf16 %v651_v53, %v648_v60  ;;  %v820_v1 = vmax.f32 %v818_v56, %v819_v58  ;;  %v1774_v7 = vpop.f32.mrf.mxu0 }
  0xe9   : > { %1821 = vmatpush3.bf16.xpose.msra.mxu1 %v874_v61  ;;  %v824_v63 = vsel %vm452_vm0, %v531_v59, -inf  ;;  %v552_v8 = vadd.f32 %v1774_v7, %v2200_v17  ;;  %v2267_v47 = vpop.f32.mrf.mxu1 }
  0xea   : > { %1822 = vmatprep.subr.bf16.mxu1 %v2056_v12  ;;  %v825_v2 = vmax.f32 %v823_v55, %v824_v63  ;;  %v871_v5 = vsel %vm860_vm2, %v846_v0, 0  ;;  %v543_v10 = vpop.f32.mrf.mxu0 }
  0xeb   : > { %v829_v11 = vsel %vm452_vm0, %v552_v8, -inf  ;;  %v544_v13 = vadd.f32 %v2200_v17, %v543_v10  ;;  %v2274_v53 = vpop.f32.mrf.mxu1 }
  0xec   : > { %998 = vrot.lane.b32.xlu0 %v846_v0, %s2058_s25  ;;  %v827_v3 = vmax.f32 %v825_v2, %v826_v62  ;;  %v1775_v14 = vpop.f32.mrf.mxu0 }
  0xed   : > { %v828_v15 = vsel %vm452_vm0, %v544_v13, -inf  ;;  %v555_v16 = vadd.f32 %v1775_v14, %v2200_v17  ;;  %v2278_v61 = vpop.f32.mrf.mxu1 }
  0xee   : > { %v842_v4 = vpack.c.bf16 %v827_v3, %v820_v1  ;;  %v830_v19 = vmax.f32 %v828_v15, %v829_v11  ;;  %v546_v20 = vpop.f32.mrf.mxu0 }
  0xef   : > { %v836_v21 = vsel %vm452_vm0, %v555_v16, -inf  ;;  %v547_v22 = vadd.f32 %v2200_v17, %v546_v20 }
  0xf0   : > { %988 = vrot.lane.b32.xlu0 %v842_v4, %s2058_s25  ;;  %v1778_v23 = vpop.f32.mrf.mxu0 }
  0xf1   : > { %1823 = vmatpush3.bf16.xpose.msra.mxu1 %v871_v5  ;;  %v835_v24 = vsel %vm452_vm0, %v547_v22, -inf  ;;  %v568_v25 = vadd.f32 %v1778_v23, %v2200_v17 }
  0xf2   : > { %1824 = vmatprep.subr.bf16.mxu1 %v2056_v12  ;;  %v837_v26 = vmax.f32 %v835_v24, %v836_v21  ;;  %v559_v27 = vpop.f32.mrf.mxu0 }
  0xf3   : > { %v560_v28 = vadd.f32 %v2200_v17, %v559_v27  ;;  %v833_v30 = vsel %vm452_vm0, %v568_v25, -inf }
  0xf4   : > { %v1779_v29 = vpop.f32.mrf.mxu0 }
  0xf5   : > { %v831_v31 = vsel %vm452_vm0, %v560_v28, -inf  ;;  %v571_v32 = vadd.f32 %v1779_v29, %v2200_v17 }
  0xf6   : > { %v832_v33 = vmax.f32 %v830_v19, %v831_v31  ;;  %v562_v34 = vpop.f32.mrf.mxu0 }
  0xf7   : > { %v563_v35 = vadd.f32 %v2200_v17, %v562_v34  ;;  %v840_v37 = vsel %vm452_vm0, %v571_v32, -inf  ;;  %v1660_v17 = vld [vmem:[%s2475_s6] ss:$0 sm:$0xff] }
  0xf8   : > { %v834_v36 = vmax.f32 %v832_v33, %v833_v30  ;;  %v1806_v42 = vpop.f32.mrf.mxu0 }
  0xf9   : > { %1825 = vmatpush3.bf16.xpose.msra.mxu1 %v868_v6  ;;  %v838_v38 = vsel %vm452_vm0, %v563_v35, -inf  ;;  %v760_v62 = vadd.f32 %v1806_v42, %v1660_v17  ;;  %v1798_v6 = vpop.f32.mrf.mxu1 }
  0xfa   : > { %1826 = vmatprep.subr.bf16.mxu1 %v2056_v12  ;;  %v839_v39 = vmax.f32 %v837_v26, %v838_v38  ;;  %v751_v43 = vpop.f32.mrf.mxu0  ;;  %v688_v32 = vadd.f32 %v1798_v6, %v2205_v18 }
  0xfb   : > { %v752_v8 = vadd.f32 %v1660_v17, %v751_v43  ;;  %v679_v19 = vpop.f32.mrf.mxu1 }
  0xfc   : > { %v841_v40 = vmax.f32 %v839_v39, %v840_v37  ;;  %v1807_v45 = vpop.f32.mrf.mxu0 }
  0xfd   : > { %v763_v1 = vadd.f32 %v1807_v45, %v1660_v17  ;;  %v1799_v27 = vpop.f32.mrf.mxu1 }
  0xfe   : > { %v2263_v41 = vpack.c.bf16 %v841_v40, %v834_v36  ;;  %v754_v46 = vpop.f32.mrf.mxu0  ;;  %v691_v33 = vadd.f32 %v1799_v27, %v2205_v18  ;;  %v680_v40 = vadd.f32 %v2205_v18, %v679_v19 }
  0xff   : > { %v755_v10 = vadd.f32 %v1660_v17, %v754_v46  ;;  %v682_v39 = vpop.f32.mrf.mxu1 }
 0x100   : > { %v1810_v49 = vpop.f32.mrf.mxu0  ;;  %v2309_v38 = vpack.c.bf16 %v691_v33, %v688_v32  ;;  %v683_v43 = vadd.f32 %v2205_v18, %v682_v39 }
 0x101   : > { %1827 = vmatpush3.bf16.xpose.msra.mxu1 %v865_v9  ;;  %v776_v52 = vadd.f32 %v1810_v49, %v1660_v17  ;;  %v2286_v9 = vpack.c.bf16 %v763_v1, %v760_v62  ;;  %v2293_v22 = vpack.c.bf16 %v755_v10, %v752_v8  ;;  %v675_v49 = vadd.f32 %v2274_v53, %v2205_v18 }
 0x102   : > { %1832 = vmatprep.subr.bf16.mxu1 %v2056_v12  ;;  %v767_v51 = vpop.f32.mrf.mxu0  ;;  %v1165_v42 = vsel %vm860_vm2, %v2309_v38, 0  ;;  %v2319_v46 = vpack.c.bf16 %v683_v43, %v680_v40 }
 0x103   : > { %v768_v55 = vadd.f32 %v1660_v17, %v767_v51  ;;  %v664_v51 = vadd.f32 %v2205_v18, %v2267_v47 }
 0x104   : > { %v1811_v54 = vpop.f32.mrf.mxu0 }
 0x105   : > { %v779_v56 = vadd.f32 %v1811_v54, %v1660_v17 }
 0x106   : > { %v770_v58 = vpop.f32.mrf.mxu0 }
 0x107   : > { %v2276_v59 = vpack.c.bf16 %v779_v56, %v776_v52  ;;  %v771_v60 = vadd.f32 %v1660_v17, %v770_v58  ;;  %v667_v52 = vadd.f32 %v2205_v18, %v2278_v61 }
 0x108   : > { %1829 = vmatmul.mubr.msk.bf16.vlgmr.msra.gmra.mxu1 %vm860_vm2, %v842_v4  ;;  %v1814_v63 = vpop.f32.mrf.mxu0 }
 0x109   : > { %1840 = vmatprep.mubr.msk.bf16.mxu1 %vm2057_vm1, %v2056_v12  ;;  %v2281_v2 = vpack.c.bf16 %v771_v60, %v768_v55  ;;  %1833 = vmatpush3.bf16.msra.mxu1 %v2276_v59  ;;  %v792_v3 = vadd.f32 %v1814_v63, %v1660_v17 }
 0x10a   : > { %1834 = vmatprep.subr.bf16.mxu1 %v2056_v12  ;;  %v783_v4 = vpop.f32.mrf.mxu0 }
 0x10b   : > { %v784_v5 = vadd.f32 %v1660_v17, %v783_v4 }
 0x10c   : > { %v1815_v7 = vpop.f32.mrf.mxu0 }
 0x10d   : > { %1835 = vmatpush3.bf16.msra.mxu1 %v2281_v2  ;;  %v795_v11 = vadd.f32 %v1815_v7, %v1660_v17 }
 0x10e   : > { %1836 = vmatprep.subr.bf16.mxu1 %v2056_v12  ;;  %v786_v14 = vpop.f32.mrf.mxu0 }
 0x10f   : > { %v2290_v15 = vpack.c.bf16 %v795_v11, %v792_v3  ;;  %v787_v16 = vadd.f32 %v1660_v17, %v786_v14 }
 0x110   : > { %v1818_v20 = vpop.f32.mrf.mxu0 }
 0x111   : > { %1837 = vmatpush3.bf16.msra.mxu1 %v2286_v9  ;;  %v2296_v23 = vpack.c.bf16 %v787_v16, %v784_v5  ;;  %v808_v24 = vadd.f32 %v1818_v20, %v1660_v17 }
 0x112   : > { %1838 = vmatprep.subr.bf16.mxu1 %v2056_v12  ;;  %v799_v25 = vpop.f32.mrf.mxu0 }
 0x113   : > { %v800_v26 = vadd.f32 %v1660_v17, %v799_v25 }
 0x114   : > { %v1819_v28 = vpop.f32.mrf.mxu0 }
 0x115   : > { %1839 = vmatpush3.bf16.msra.mxu1 %v2293_v22  ;;  %v811_v29 = vadd.f32 %v1819_v28, %v1660_v17 }
 0x116   : > { %v802_v31 = vpop.f32.mrf.mxu0  ;;  %1856 = vmatprep.subr.bf16.mxu1 %v2056_v12 }
 0x117   : > { %v2304_v34 = vpack.c.bf16 %v811_v29, %v808_v24  ;;  %v803_v35 = vadd.f32 %v1660_v17, %v802_v31  ;;  %v672_v17 = vadd.f32 %v2265_v44, %v2205_v18  ;;  %v2338_v44 = vpack.c.bf16 %v667_v52, %v664_v51 }
 0x119   : > { %v2307_v37 = vpack.c.bf16 %v803_v35, %v800_v26  ;;  %v1156_v53 = vsel %vm860_vm2, %v2338_v44, 0 }
 0x152   : > { %v997_v13 = vpop.permute.xlu1 %996 }
 0x153   : > { %v1009_v21 = vsel %vm860_vm2, %v997_v13, 0 }
 0x156   : > { %v995_v30 = vpop.permute.xlu1 %994 }
 0x157   : > { %v1006_v36 = vsel %vm860_vm2, %v995_v30, 0 }
 0x15a   : > { %v1001_v48 = vpop.permute.xlu0 %1000 }
 0x15b   : > { %v1015_v50 = vsel %vm860_vm2, %v1001_v48, 0  ;;  %v1162_v48 = vsel %vm860_vm2, %v2319_v46, 0 }
 0x15c   : > { %1845 = vmatpush3.bf16.xpose.msra.mxu0 %v1015_v50  ;;  %v2329_v50 = vpack.c.bf16 %v675_v49, %v672_v17 }
 0x15d   : > { %1846 = vmatprep.subr.bf16.mxu0 %v2056_v12 }
 0x15e   : > { %v999_v57 = vpop.permute.xlu0 %998  ;;  %v1159_v54 = vsel %vm860_vm2, %v2329_v50, 0 }
 0x15f   : > { %v1012_v0 = vsel %vm860_vm2, %v999_v57, 0 }
 0x162   : > { %v989_v45 = vpop.permute.xlu0 %988 }
 0x164   : > { %1847 = vmatpush3.bf16.xpose.msra.mxu0 %v1012_v0 }
 0x165   : > { %1848 = vmatprep.subr.bf16.mxu0 %v2056_v12 }
 0x16c   : > { %1849 = vmatpush3.bf16.xpose.msra.mxu0 %v1009_v21 }
 0x16d   : > { %1850 = vmatprep.subr.bf16.mxu0 %v2056_v12 }
 0x174   : > { %1851 = vmatpush3.bf16.xpose.msra.mxu0 %v1006_v36 }
 0x175   : > { %1868 = vmatprep.subr.bf16.mxu0 %v2056_v12 }
 0x17b   : > { %1853 = vmatmul.mubr.msk.bf16.vlgmr.msra.gmra.mxu0 %vm860_vm2, %v989_v45 }
 0x17c   : > { %1869 = vmatpush3.bf16.xpose.msra.mxu0 %v1165_v42  ;;  %1876 = vmatprep.mubr.msk.bf16.mxu0 %vm2057_vm1, %v2056_v12 }
 0x17d   : > { %1870 = vmatprep.subr.bf16.mxu0 %v2056_v12 }
 0x184   : > { %1871 = vmatpush3.bf16.xpose.msra.mxu0 %v1162_v48 }
 0x185   : > { %1872 = vmatprep.subr.bf16.mxu0 %v2056_v12 }
 0x18c   : > { %1873 = vmatpush3.bf16.xpose.msra.mxu0 %v1159_v54 }
 0x18d   : > { %1874 = vmatprep.subr.bf16.mxu0 %v2056_v12 }
 0x194   : > { %1875 = vmatpush3.bf16.xpose.msra.mxu0 %v1156_v53 }
 0x195   : > { %1904 = vmatprep.subr.bf16.mxu0 %v2056_v12 }
 0x19b   : > { %1877 = vmatmul.mubr.msk.bf16.vlgmr.msra.gmra.mxu0 %vm860_vm2, %v2263_v41 }
 0x19c   : > { %1912 = vmatprep.mubr.msk.bf16.mxu0 %vm2057_vm1, %v2056_v12 }
 0x1c8   : > { %v910_v18 = vpop.f32.mrf.mxu1 }
 0x1c9   : > { %v918_v47 = vsel %vm917_vm3, %v910_v18, -inf }
 0x1ca   : > { %919 = vmax.xlane.f32.xlu1 %v918_v47  ;;  %v1830_v55 = vpop.f32.mrf.mxu1 }
 0x1cc   : > { %v913_v56 = vpop.f32.mrf.mxu1 }
 0x1cd   : > { %v921_v57 = vsel %vm917_vm3, %v913_v56, -inf }
 0x1ce   : > { %922 = vmax.xlane.f32.xlu0 %v921_v57  ;;  %v1831_v58 = vpop.f32.mrf.mxu1 }
 0x23b   : > { %v1051_v60 = vpop.f32.mrf.mxu0 }
 0x23c   : > { %v1058_v61 = vsel %vm917_vm3, %v1051_v60, -inf }
 0x23d   : > { %v1854_v62 = vpop.f32.mrf.mxu0  ;;  %1059 = vmax.xlane.f32.xlu0 %v1058_v61 }
 0x23f   : > { %v1054_v63 = vpop.f32.mrf.mxu0 }
 0x240   : > { %v1061_v0 = vsel %vm917_vm3, %v1054_v63, -inf }
 0x241   : > { %v1855_v1 = vpop.f32.mrf.mxu0  ;;  %1062 = vmax.xlane.f32.xlu1 %v1061_v0 }
 0x253   : > { %v920_v3 = vpop.xlane.xlu1 %919 }
 0x254   : > { %v924_v4 = vsub.f32 %v910_v18, %v920_v3 }
 0x256   : > { %v926_v5 = vmul.f32 1.442695, %v924_v4 }
 0x257   : > { %v923_v6 = vpop.xlane.xlu0 %922 }
 0x258   : > { %1984 = vpow2.f32 %v926_v5  ;;  %v925_v7 = vsub.f32 %v913_v56, %v923_v6 }
 0x25a   : > { %v928_v8 = vmul.f32 1.442695, %v925_v7 }
 0x25b   : > { %v1201_v10 = vpop.f32.mrf.mxu0 }
 0x25c   : > { %1986 = vpow2.f32 %v928_v8  ;;  %v1208_v11 = vsel %vm917_vm3, %v1201_v10, -inf }
 0x25d   : > { %v1878_v13 = vpop.f32.mrf.mxu0  ;;  %1209 = vmax.xlane.f32.xlu0 %v1208_v11 }
 0x25f   : > { %v1204_v14 = vpop.f32.mrf.mxu0 }
 0x260   : > { %v1211_v16 = vsel %vm917_vm3, %v1204_v14, -inf }
 0x261   : > { %1212 = vmax.xlane.f32.xlu1 %v1211_v16  ;;  %v1879_v19 = vpop.f32.mrf.mxu0 }
 0x265   : > { %v1985_v20 = vpop.eup %1984 }
 0x266   : > { %v930_v21 = vsel %vm917_vm3, %v1985_v20, 0.0 }
 0x267   : > { %931 = vadd.xlane.f32.xlu0 %v930_v21 }
 0x269   : > { %v1987_v24 = vpop.eup %1986 }
 0x26a   : > { %v933_v25 = vsel %vm917_vm3, %v1987_v24, 0.0 }
 0x26b   : > { %934 = vadd.xlane.f32.xlu1 %v933_v25 }
 0x27d   : > { %1091 = vrot.lane.b32.xlu0 %v2276_v59, %s2058_s25 }
 0x2c6   : > { %v1060_v26 = vpop.xlane.xlu0 %1059 }
 0x2c7   : > { %v1064_v27 = vsub.f32 %v1051_v60, %v1060_v26 }
 0x2c9   : > { %v1066_v28 = vmul.f32 1.442695, %v1064_v27 }
 0x2ca   : > { %v1063_v29 = vpop.xlane.xlu1 %1062 }
 0x2cb   : > { %1988 = vpow2.f32 %v1066_v28  ;;  %v1065_v30 = vsub.f32 %v1054_v63, %v1063_v29 }
 0x2cd   : > { %v1068_v31 = vmul.f32 1.442695, %v1065_v30 }
 0x2cf   : > { %1990 = vpow2.f32 %v1068_v31 }
 0x2d8   : > { %v1989_v32 = vpop.eup %1988 }
 0x2d9   : > { %v1070_v33 = vsel %vm917_vm3, %v1989_v32, 0.0 }
 0x2da   : > { %1071 = vadd.xlane.f32.xlu0 %v1070_v33 }
 0x2dc   : > { %v1991_v35 = vpop.eup %1990 }
 0x2dd   : > { %v1073_v36 = vsel %vm917_vm3, %v1991_v35, 0.0 }
 0x2de   : > { %1074 = vadd.xlane.f32.xlu1 %v1073_v36 }
 0x2e6   : > { %v1210_v39 = vpop.xlane.xlu0 %1209 }
 0x2e7   : > { %v1214_v43 = vsub.f32 %v1201_v10, %v1210_v39 }
 0x2e9   : > { %v1216_v45 = vmul.f32 1.442695, %v1214_v43 }
 0x2ea   : > { %v1213_v59 = vpop.xlane.xlu1 %1212 }
 0x2ef   : > { %1089 = vrot.lane.b32.xlu1 %v2281_v2, %s2058_s25  ;;  %v1215_v2 = vsub.f32 %v1204_v14, %v1213_v59 }
 0x2f0   : > { %1087 = vrot.lane.b32.xlu0 %v2286_v9, %s2058_s25  ;;  %v932_v40 = vpop.xlane.xlu0 %931 }
 0x2f1   : > { %1992 = vrcp.f32 %v932_v40  ;;  %v1218_v9 = vmul.f32 1.442695, %v1215_v2 }
 0x2f4   : > { %v935_v42 = vpop.xlane.xlu1 %934  ;;  %1085 = vrot.lane.b32.xlu0 %v2293_v22, %s2058_s25  ;;  %v1092_v54 = vpop.permute.xlu0 %1091 }
 0x2f5   : > { %1994 = vrcp.f32 %v935_v42 }
 0x2f6   : > { %1996 = vpow2.f32 %v1216_v45 }
 0x2f7   : > { %1998 = vpow2.f32 %v1218_v9 }
 0x2f8   : > { %1288 = vrot.lane.b32.xlu0 %v2319_v46, %s2058_s25 }
 0x2fc   : > { %1284 = vrot.lane.b32.xlu0 %v2338_v44, %s2058_s25 }
 0x2fe   : > { %v1993_v48 = vpop.eup %1992 }
 0x2ff   : > { %v938_v49 = vmul.f32 %v1993_v48, %v1985_v20 }
 0x302   : > { %v1995_v17 = vpop.eup %1994 }
 0x303   : > { %v939_v51 = vmul.f32 %v1995_v17, %v1987_v24  ;;  %v1997_v22 = vpop.eup %1996 }
 0x304   : > { %v1220_v46 = vsel %vm917_vm3, %v1997_v22, 0.0  ;;  %v1999_v44 = vpop.eup %1998 }
 0x305   : > { %v940_v52 = vpack.c.bf16 %v939_v51, %v938_v49  ;;  %v1223_v53 = vsel %vm917_vm3, %v1999_v44, 0.0 }
 0x307   : > { %1841 = vmatmul.mubr.msk.bf16.vlgmr.msra.gmra.mxu1 %vm917_vm3, %v940_v52 }
 0x308   : > { %1857 = vmatpush3.bf16.msra.mxu1 %v1092_v54  ;;  %1864 = vmatprep.mubr.msk.bf16.mxu1 %vm2057_vm1, %v2056_v12 }
 0x309   : > { %1858 = vmatprep.subr.bf16.mxu1 %v2056_v12 }
 0x313   : > { %1221 = vadd.xlane.f32.xlu1 %v1220_v46 }
 0x317   : > { %1224 = vadd.xlane.f32.xlu1 %v1223_v53 }
 0x328   : > { %1290 = vrot.lane.b32.xlu1 %v2309_v38, %s2058_s25 }
 0x32c   : > { %1286 = vrot.lane.b32.xlu1 %v2329_v50, %s2058_s25 }
 0x330   : > { %1278 = vrot.lane.b32.xlu1 %v2263_v41, %s2058_s25 }
 0x363   : > { %v1072_v18 = vpop.xlane.xlu0 %1071 }
 0x364   : > { %2000 = vrcp.f32 %v1072_v18 }
 0x367   : > { %v1075_v47 = vpop.xlane.xlu1 %1074  ;;  %v1088_v56 = vpop.permute.xlu0 %1087 }
 0x368   : > { %2002 = vrcp.f32 %v1075_v47 }
 0x36b   : > { %v1090_v55 = vpop.permute.xlu1 %1089  ;;  %v1086_v38 = vpop.permute.xlu0 %1085 }
 0x36c   : > { %1859 = vmatpush3.bf16.msra.mxu1 %v1090_v55 }
 0x36d   : > { %1860 = vmatprep.subr.bf16.mxu1 %v2056_v12 }
 0x36f   : > { %v1289_v7 = vpop.permute.xlu0 %1288 }
 0x370   : > { %1861 = vmatpush3.bf16.msra.mxu1 %v1088_v56  ;;  %v1302_v8 = vsel %vm860_vm2, %v1289_v7, 0 }
 0x371   : > { %1862 = vmatprep.subr.bf16.mxu1 %v2056_v12  ;;  %v2001_v57 = vpop.eup %2000 }
 0x372   : > { %v1078_v50 = vmul.f32 %v2001_v57, %v1989_v32 }
 0x373   : > { %v1285_v14 = vpop.permute.xlu0 %1284 }
 0x374   : > { %1863 = vmatpush3.bf16.msra.mxu1 %v1086_v38  ;;  %v1296_v19 = vsel %vm860_vm2, %v1285_v14, 0 }
 0x375   : > { %v2003_v58 = vpop.eup %2002  ;;  %1880 = vmatprep.subr.bf16.mxu1 %v2056_v12 }
 0x376   : > { %v1079_v41 = vmul.f32 %v2003_v58, %v1991_v35 }
 0x378   : > { %v1080_v60 = vpack.c.bf16 %v1079_v41, %v1078_v50  ;;  %v1982_v50 = vld [vmem:[%s2476_s7 + $0x8] sm:$0xff]  }
 0x37a   : > { %1865 = vmatmul.mubr.msk.bf16.vlgmr.msra.gmra.mxu1 %vm917_vm3, %v1080_v60 }
 0x37b   : > { %1881 = vmatpush3.bf16.msra.mxu1 %v2304_v34  ;;  %1888 = vmatprep.mubr.msk.bf16.mxu1 %vm2057_vm1, %v2056_v12 }
 0x37c   : > { %1882 = vmatprep.subr.bf16.mxu1 %v2056_v12 }
 0x37f   : > { %1883 = vmatpush3.bf16.msra.mxu1 %v2307_v37 }
 0x380   : > { %1884 = vmatprep.subr.bf16.mxu1 %v2056_v12 }
 0x383   : > { %1885 = vmatpush3.bf16.msra.mxu1 %v2290_v15 }
 0x384   : > { %1886 = vmatprep.subr.bf16.mxu1 %v2056_v12 }
 0x387   : > { %1887 = vmatpush3.bf16.msra.mxu1 %v2296_v23 }
 0x388   : > { %1892 = vmatprep.subr.bf16.mxu1 %v2056_v12 }
 0x39c   : > { %v1222_v61 = vpop.xlane.xlu1 %1221 }
 0x39d   : > { %2004 = vrcp.f32 %v1222_v61 }
 0x3a0   : > { %v1225_v62 = vpop.xlane.xlu1 %1224 }
 0x3a1   : > { %2006 = vrcp.f32 %v1225_v62 }
 0x3a4   : > { %v1291_v4 = vpop.permute.xlu1 %1290 }
 0x3a5   : > { %v1305_v6 = vsel %vm860_vm2, %v1291_v4, 0 }
 0x3a8   : > { %v1287_v10 = vpop.permute.xlu1 %1286 }
 0x3a9   : > { %v1299_v11 = vsel %vm860_vm2, %v1287_v10, 0 }
 0x3aa   : > { %v2005_v63 = vpop.eup %2004 }
 0x3ab   : > { %v1228_v1 = vmul.f32 %v2005_v63, %v1997_v22 }
 0x3ac   : > { %v1279_v24 = vpop.permute.xlu1 %1278 }
 0x3ae   : > { %v2007_v0 = vpop.eup %2006 }
 0x3af   : > { %v1229_v3 = vmul.f32 %v2007_v0, %v1999_v44 }
 0x3b1   : > { %v1230_v5 = vpack.c.bf16 %v1229_v3, %v1228_v1 }
 0x3b3   : > { %1889 = vmatmul.mubr.msk.bf16.vlgmr.msra.gmra.mxu1 %vm917_vm3, %v1230_v5  ;;  %v1679_v5 = vld [vmem:[%s2477_s8] ss:$0 sm:$0xff] }
 0x3b4   : > { %1893 = vmatpush3.bf16.xpose.msra.mxu1 %v1305_v6  ;;  %1900 = vmatprep.mubr.msk.bf16.mxu1 %vm2057_vm1, %v2056_v12 }
 0x3b5   : > { %1894 = vmatprep.subr.bf16.mxu1 %v2056_v12 }
 0x3bc   : > { %1895 = vmatpush3.bf16.xpose.msra.mxu1 %v1302_v8 }
 0x3bd   : > { %1896 = vmatprep.subr.bf16.mxu1 %v2056_v12 }
 0x3c4   : > { %1897 = vmatpush3.bf16.xpose.msra.mxu1 %v1299_v11 }
 0x3c5   : > { %1898 = vmatprep.subr.bf16.mxu1 %v2056_v12 }
 0x3c7   : > { %v978_v13 = vpop.f32.mrf.mxu1 }
 0x3c8   : > { %985 = vst.msk [vmem:[#allocation2] sm:$0xff] %vm860_vm2, %v978_v13 }
 0x3c9   : > { %v1842_v16 = vpop.f32.mrf.mxu1 }
 0x3cb   : > { %v981_v20 = vpop.f32.mrf.mxu1 }
 0x3cc   : > { %986 = vst.msk [vmem:[#allocation2 + $0x8] sm:$0xff] %vm860_vm2, %v981_v20  ;;  %1899 = vmatpush3.bf16.xpose.msra.mxu1 %v1296_v19 }
 0x3cd   : > { %v1843_v21 = vpop.f32.mrf.mxu1 }
 0x3d3   : > { %1901 = vmatmul.mubr.msk.bf16.vlgmr.msra.gmra.mxu1 %vm860_vm2, %v1279_v24 }
 0x43a   : > { %v1134_v25 = vpop.f32.mrf.mxu1 }
 0x43c   : > { %v1866_v26 = vpop.f32.mrf.mxu1 }
 0x43e   : > { %v1137_v27 = vpop.f32.mrf.mxu1 }
 0x440   : > { %v1867_v28 = vpop.f32.mrf.mxu1 }
 0x473   : > { %v1268_v29 = vpop.f32.mrf.mxu1 }
 0x474   : > { %1275 = vst.msk [vmem:[#allocation2 + $0x10] sm:$0xff] %vm860_vm2, %v1268_v29 }
 0x475   : > { %v1890_v30 = vpop.f32.mrf.mxu1 }
 0x477   : > { %v1271_v31 = vpop.f32.mrf.mxu1 }
 0x478   : > { %1276 = vst.msk [vmem:[#allocation2 + $0x18] sm:$0xff] %vm860_vm2, %v1271_v31 }
 0x479   : > { %v1891_v32 = vpop.f32.mrf.mxu1 }
 0x493   : > { %v1341_v33 = vpop.f32.mrf.mxu1 }
 0x494   : > { %v1348_v35 = vsel %vm917_vm3, %v1341_v33, -inf }
 0x495   : > { %1349 = vmax.xlane.f32.xlu0 %v1348_v35  ;;  %v1902_v36 = vpop.f32.mrf.mxu1 }
 0x497   : > { %v1344_v39 = vpop.f32.mrf.mxu1 }
 0x498   : > { %v1351_v59 = vsel %vm917_vm3, %v1344_v39, -inf }
 0x499   : > { %1352 = vmax.xlane.f32.xlu1 %v1351_v59  ;;  %v1903_v40 = vpop.f32.mrf.mxu1 }
 0x4aa   : > { %1381 = vrot.lane.b32.xlu1 %v2304_v34, %s2058_s25 }
 0x4ae   : > { %1377 = vrot.lane.b32.xlu1 %v2290_v15, %s2058_s25 }
 0x4b2   : > { %1375 = vrot.lane.b32.xlu1 %v2296_v23, %s2058_s25 }
 0x4b6   : > { %1145 = vrot.lane.b32.xlu1 %v1137_v27, %s2059_s28 }
 0x51e   : > { %v1350_v42 = vpop.xlane.xlu0 %1349 }
 0x51f   : > { %v1354_v43 = vsub.f32 %v1341_v33, %v1350_v42 }
 0x521   : > { %v1356_v45 = vmul.f32 1.442695, %v1354_v43 }
 0x522   : > { %v1353_v2 = vpop.xlane.xlu1 %1352 }
 0x523   : > { %2008 = vpow2.f32 %v1356_v45  ;;  %v1355_v48 = vsub.f32 %v1344_v39, %v1353_v2 }
 0x525   : > { %v1358_v17 = vmul.f32 1.442695, %v1355_v48 }
 0x526   : > { %v1382_v9 = vpop.permute.xlu1 %1381 }
 0x527   : > { %2010 = vpow2.f32 %v1358_v17  ;;  %1905 = vmatpush3.bf16.msra.mxu0 %v1382_v9 }
 0x528   : > { %1906 = vmatprep.subr.bf16.mxu0 %v2056_v12 }
 0x52a   : > { %v1378_v34 = vpop.permute.xlu1 %1377 }
 0x52e   : > { %v1376_v15 = vpop.permute.xlu1 %1375 }
 0x530   : > { %v2009_v49 = vpop.eup %2008 }
 0x531   : > { %v1360_v23 = vsel %vm917_vm3, %v2009_v49, 0.0 }
 0x532   : > { %1361 = vadd.xlane.f32.xlu0 %v1360_v23  ;;  %v1146_v51 = vpop.permute.xlu1 %1145 }
 0x533   : > { %1151 = vst.msk [vmem:[#allocation2 + $0x8] sm:$0xff] %vm1149_vm4, %v1146_v51 }
 0x534   : > { %v2011_v52 = vpop.eup %2010 }
 0x535   : > { %v1363_v54 = vsel %vm917_vm3, %v2011_v52, 0.0 }
 0x536   : > { %1364 = vadd.xlane.f32.xlu0 %v1363_v54 }
 0x53a   : > { %v1442_v57 = vld [vmem:[#allocation2 + $0x8] sm:$0xff] }
 0x54c   : > { %1379 = vrot.lane.b32.xlu0 %v2307_v37, %s2058_s25 }
 0x550   : > { %1143 = vrot.lane.b32.xlu0 %v1134_v25, %s2059_s28 }
 0x5bb   : > { %v1362_v22 = vpop.xlane.xlu0 %1361 }
 0x5bc   : > { %2012 = vrcp.f32 %v1362_v22 }
 0x5bf   : > { %v1365_v46 = vpop.xlane.xlu0 %1364 }
 0x5c0   : > { %2014 = vrcp.f32 %v1365_v46 }
 0x5c3   : > { %v1380_v44 = vpop.permute.xlu0 %1379 }
 0x5c4   : > { %1907 = vmatpush3.bf16.msra.mxu0 %v1380_v44 }
 0x5c5   : > { %1908 = vmatprep.subr.bf16.mxu0 %v2056_v12 }
 0x5c7   : > { %v1144_v53 = vpop.permute.xlu0 %1143 }
 0x5c8   : > { %1150 = vst.msk [vmem:[#allocation2] sm:$0xff] %vm1149_vm4, %v1144_v53  ;;  %1909 = vmatpush3.bf16.msra.mxu0 %v1378_v34 }
 0x5c9   : > { %1910 = vmatprep.subr.bf16.mxu0 %v2056_v12  ;;  %v2013_v18 = vpop.eup %2012  ;;  %v1983_v12 = vld [vmem:[%s2476_s7] sm:$0xff]  }
 0x5ca   : > { %v1368_v37 = vmul.f32 %v2013_v18, %v2009_v49 }
 0x5cc   : > { %1911 = vmatpush3.bf16.msra.mxu0 %v1376_v15 }
 0x5cd   : > { %v2015_v47 = vpop.eup %2014  ;;  %1916 = vmatprep.subr.bf16.mxu0 %v1982_v50 }
 0x5ce   : > { %v1369_v55 = vmul.f32 %v2015_v47, %v2011_v52 }
 0x5cf   : > { %v1441_v56 = vld [vmem:[#allocation2] sm:$0xff] }
 0x5d0   : > { %v1370_v38 = vpack.c.bf16 %v1369_v55, %v1368_v37  ;;  %v1445_v58 = vpack.c.bf16 %v1442_v57, %v1441_v56 }
 0x5d2   : > { %1913 = vmatmul.mubr.msk.bf16.vlgmr.msra.gmra.mxu0 %vm917_vm3, %v1370_v38 }
 0x5d3   : > { %1920 = vmatprep.mubr.msk.bf16.mxu0 %vm452_vm0, %v1445_v58  ;;  %1917 = vmatpush3.bf16.msra.mxu0 %v1982_v50 }
 0x5d4   : > { %1918 = vmatprep.subr.bf16.mxu0 %v1983_v12 }
 0x5d7   : > { %1919 = vmatpush3.bf16.msra.mxu0 %v1983_v12 }
 0x692   : > { %v1424_v41 = vpop.f32.mrf.mxu0 }
 0x693   : > { %1433 = vrot.lane.b32.xlu0 %v1424_v41, %s2059_s28 }
 0x694   : > { %v1914_v60 = vpop.f32.mrf.mxu0 }
 0x696   : > { %v1427_v61 = vpop.f32.mrf.mxu0 }
 0x697   : > { %1435 = vrot.lane.b32.xlu1 %v1427_v61, %s2059_s28 }
 0x698   : > { %v1915_v62 = vpop.f32.mrf.mxu0 }
 0x705   : > { %v1434_v63 = vpop.permute.xlu0 %1433 }
 0x706   : > { %1439 = vst.msk [vmem:[#allocation2 + $0x10] sm:$0xff] %vm1149_vm4, %v1434_v63 }
 0x709   : > { %v1436_v0 = vpop.permute.xlu1 %1435 }
 0x70a   : > { %1440 = vst.msk [vmem:[#allocation2 + $0x18] sm:$0xff] %vm1149_vm4, %v1436_v0 }
 0x70d   : > { %v1443_v1 = vld [vmem:[#allocation2 + $0x10] sm:$0xff] }
 0x711   : > { %v1444_v3 = vld [vmem:[#allocation2 + $0x18] sm:$0xff] }
 0x712   : > { %v1446_v4 = vpack.c.bf16 %v1444_v3, %v1443_v1 }
 0x714   : > { %1921 = vmatmul.mubr.msk.bf16.vlgmr.msra.gmra.mxu0 %vm452_vm0, %v1446_v4 }
 0x7d4   : > { %v1922_v6 = vpop.f32.mrf.mxu0 }
 0x7d5   : > { %v1519_v7 = vadd.f32 %v1922_v6, %v1679_v5 }
 0x7d6   : > { %v1510_v8 = vpop.f32.mrf.mxu0 }
 0x7d7   : > { %1527 = vst.msk [vmem:[%s370_s27 + $0x10] sm:$0xff] %vm452_vm0, %v1519_v7  ;;  %v1511_v10 = vadd.f32 %v1679_v5, %v1510_v8 }
 0x7d8   : > { %v1923_v11 = vpop.f32.mrf.mxu0 }
 0x7d9   : > { %1525 = vst.msk [vmem:[%s370_s27] sm:$0xff] %vm452_vm0, %v1511_v10  ;;  %v1522_v13 = vadd.f32 %v1923_v11, %v1679_v5 }
 0x7da   : > { %v1513_v14 = vpop.f32.mrf.mxu0 }
 0x7db   : > { %1528 = vst.msk [vmem:[%s370_s27 + $0x18] sm:$0xff] %vm452_vm0, %v1522_v13  ;;  %v1514_v16 = vadd.f32 %v1679_v5, %v1513_v14 }
 0x7dd   : > { %1526 = vst.msk [vmem:[%s370_s27 + $0x8] sm:$0xff] %vm452_vm0, %v1514_v16 }
 0x7de PF: > { %s19_s13 = sadd.s32 1, %s2054_s13   ;;  %s2479_s30 = smov %s2046_s11 }
 0x7df   : > { %p16_p8 = scmp.ge.s32.totalorder %s19_s13, 6   ;;  %s2480_s10 = smov %s2050_s12 }
 0x7e0   : > { %s2481_s11 = smov %s2484_s14  ;;  %s2482_s12 = smov %s2488_s15 }
 0x7e1   :  { %18 = sbr.rel (!%p16_p8) target bundleno = 3 (0x3), region = 86 }

</bundles_post_ra>
